<compile_context>
chip_gen: v7x
topology: tpu7x:2x2x1
jax: 0.10.0
libtpu: 0.0.40
codegen_flags: <defaults>
</compile_context>

<pallas_src>
import math

import jax
import jax.numpy as jnp
import numpy as np
from jax.experimental import pallas as pl
from jax.experimental.pallas import tpu as pltpu

KH = KW = 7
PAD = 3
C_IN = 3
C_OUT = 8
K_DIM = C_IN * KH * KW   # 147
EPS = 1e-6               # old torch PairwiseDistance adds eps to the difference before the norm


def _pa_kernel(p_ref, w_ref, out_ref):
    # p_ref:   (147, TILE) bf16  -- diff-frame im2col patches, spatial on lanes
    # w_ref:   (8, 147)    bf16  -- shallow_conv weights (bias cancels in the diff)
    # out_ref: (1, TILE)   f32   -- lane-dense pairwise distances
    acc = jnp.dot(w_ref[...], p_ref[...], preferred_element_type=jnp.float32)  # (8, TILE) f32
    d = acc + EPS
    out_ref[...] = jnp.sqrt(jnp.sum(d * d, axis=0, keepdims=True))


def pa_forward(x, weight, bias, n_length, tile_n=2048):
    """x: (B, n_length*3, h, w) f32; weight: (8,3,7,7); bias: (8,). Returns (B, n_length-1, h, w)."""
    del bias  # conv bias cancels exactly in feats[i] - feats[i+1]
    b, _, h, w_sp = x.shape
    hw = h * w_sp
    t1 = n_length - 1
    n_total = b * t1 * hw

    # --- host-side glue (pure data movement, kept minimal and bf16) -------------------
    frames = x.reshape(b, n_length, C_IN, h, w_sp)
    # frame difference in f32 (small-magnitude diffs keep precision), THEN cast to bf16
    dframes = (frames[:, :-1] - frames[:, 1:]).astype(jnp.bfloat16)      # (B, T-1, 3, H, W)
    # channel-first on the SMALL (3x) tensor, so the 49x expansion is built directly in
    # (K, B*(T-1)*HW) order and no expanded-tensor transpose is ever materialized.
    dcf = jnp.transpose(dframes, (2, 0, 1, 3, 4))                        # (3, B, T-1, H, W)
    dpad = jnp.pad(dcf, ((0, 0), (0, 0), (0, 0), (PAD, PAD), (PAD, PAD)))
    cols = [dpad[:, :, :, i:i + h, j:j + w_sp] for i in range(KH) for j in range(KW)]
    patches = jnp.stack(cols, axis=1)                                    # (3, 49, B, T-1, H, W) bf16
    patches = patches.reshape(K_DIM, n_total)                            # contiguous; K order = (c, kh, kw)

    # --- lane tiling -------------------------------------------------------------------
    tile = int(min(tile_n, -(-n_total // 128) * 128))                    # multiple of 128
    tile = max(tile, 128)
    n_pad = -(-n_total // tile) * tile
    if n_pad != n_total:
        patches = jnp.pad(patches, ((0, 0), (0, n_pad - n_total)))       # zero lanes -> discarded later
    num_tiles = n_pad // tile

    w_mat = weight.reshape(C_OUT, K_DIM).astype(jnp.bfloat16)            # (8, 147), (c,kh,kw) order

    # VMEM budget: double-buffered bf16 patch tiles (147 -> 160 packed sublanes),
    # double-buffered f32 output rows, f32 matmul/epilogue temps, weights + headroom.
    vmem_bytes = int(min(2 * (160 * tile * 2) + 2 * (8 * tile * 4) + 8 * (8 * tile * 4) + (2 << 20),
                         100 * 1024 * 1024))

    out = pl.pallas_call(
        _pa_kernel,
        out_shape=jax.ShapeDtypeStruct((1, n_pad), jnp.float32),
        grid=(num_tiles,),
        in_specs=[
            pl.BlockSpec((K_DIM, tile), lambda j: (0, j)),
            pl.BlockSpec((C_OUT, K_DIM), lambda j: (0, 0)),
        ],
        out_specs=pl.BlockSpec((1, tile), lambda j: (0, j)),
        compiler_params=pltpu.CompilerParams(
            dimension_semantics=("parallel",),
            vmem_limit_bytes=vmem_bytes),
    )(patches, w_mat)

    # (1, n_pad) -> drop padded lanes -> (B, T-1, h, w): contiguous reshape, no transpose.
    return out[0, :n_total].reshape(b, t1, h, w_sp)


def pa_reference(x, weight, bias, n_length):
    """Pure-JAX reference replicating the PyTorch forward."""
    b, _, h, w_sp = x.shape
    frames = x.reshape(-1, C_IN, h, w_sp)
    y = jax.lax.conv_general_dilated(
        frames, weight, window_strides=(1, 1), padding=[(PAD, PAD), (PAD, PAD)],
        dimension_numbers=("NCHW", "OIHW", "NCHW")) + bias[None, :, None, None]
    y = y.reshape(b, n_length, C_OUT, h * w_sp)
    ds = []
    for i in range(n_length - 1):
        diff = y[:, i] - y[:, i + 1] + EPS
        ds.append(jnp.sqrt(jnp.sum(diff * diff, axis=1)))                # reduce over 8 channels
    d = jnp.stack(ds, axis=1)
    return d.reshape(b, n_length - 1, h, w_sp)


if __name__ == "__main__":
    n_length = 4
    B, h, w = 2, 16, 16

    key = jax.random.PRNGKey(0)
    kx, kw_, kb = jax.random.split(key, 3)
    bound = 1.0 / math.sqrt(C_IN * KH * KW)                              # PyTorch Conv2d default init range
    weight = jax.random.uniform(kw_, (C_OUT, C_IN, KH, KW), jnp.float32, -bound, bound)
    bias = jax.random.uniform(kb, (C_OUT,), jnp.float32, -bound, bound)
    x = jax.random.normal(kx, (B, n_length * C_IN, h, w), jnp.float32)

    out = jax.block_until_ready(pa_forward(x, weight, bias, n_length))
    ref = jax.block_until_ready(pa_reference(x, weight, bias, n_length))
    assert out.shape == (B, n_length - 1, h, w)
    np.testing.assert_allclose(np.asarray(out), np.asarray(ref), rtol=2e-2, atol=2e-2)
    print("KERNEL_OK")
</pallas_src>

<mosaic_0001>
module attributes {stable_mosaic.version = 11 : i64} {
  func.func @_pa_kernel(%arg0: i32, %arg1: memref<147x1536xbf16, #tpu.memory_space<vmem>>, %arg2: memref<8x147xbf16, #tpu.memory_space<vmem>>, %arg3: memref<1x1536xf32, #tpu.memory_space<vmem>>) attributes {dimension_semantics = [#tpu.dimension_semantics<parallel>], iteration_bounds = array<i64: 1>, scalar_prefetch = 0 : i64, scratch_operands = 0 : i64, tpu.core_type = #tpu.core_type<tc>, window_params = [{transform_indices = @transform_0, window_bounds = array<i64: 147, 1536>}, {pipeline_mode = #tpu.pipeline_mode<synchronous>, transform_indices = @transform_1, window_bounds = array<i64: 8, 147>}, {transform_indices = @transform_2, window_bounds = array<i64: 1, 1536>}]} {
    %c0 = arith.constant 0 : index
    %c0_0 = arith.constant 0 : index
    %0 = vector.load %arg2[%c0, %c0_0] : memref<8x147xbf16, #tpu.memory_space<vmem>>, vector<8x147xbf16>
    %c0_1 = arith.constant 0 : index
    %c0_2 = arith.constant 0 : index
    %1 = vector.load %arg1[%c0_1, %c0_2] : memref<147x1536xbf16, #tpu.memory_space<vmem>>, vector<147x1536xbf16>
    %cst = arith.constant dense<0.000000e+00> : vector<8x1536xf32>
    %2 = tpu.matmul %0, %1, %cst {dimension_numbers = #tpu.dot_dimension_numbers<[1], [0], [0], [1], [0, 0, 1, 1], [], []>} : vector<8x147xbf16>, vector<147x1536xbf16>, vector<8x1536xf32> -> vector<8x1536xf32>
    %cst_3 = arith.constant 9.99999997E-7 : f32
    %3 = vector.broadcast %cst_3 : f32 to vector<8x1536xf32>
    %4 = arith.addf %2, %3 : vector<8x1536xf32>
    %5 = arith.mulf %4, %4 : vector<8x1536xf32>
    %cst_4 = arith.constant dense<0.000000e+00> : vector<1536xf32>
    %6 = vector.multi_reduction <add>, %5, %cst_4 [0] : vector<8x1536xf32> to vector<1536xf32>
    %7 = vector.shape_cast %6 : vector<1536xf32> to vector<1x1536xf32>
    %8 = math.sqrt %7 : vector<1x1536xf32>
    %c0_5 = arith.constant 0 : index
    %c0_6 = arith.constant 0 : index
    %9 = vector.load %arg3[%c0_5, %c0_6] : memref<1x1536xf32, #tpu.memory_space<vmem>>, vector<1x1536xf32>
    tpu.vector_store %arg3[%c0_5, %c0_6], %8 {strides = array<i32>} : memref<1x1536xf32, #tpu.memory_space<vmem>>, vector<1x1536xf32>,
    return
  }
  func.func @transform_0(%arg0: i32) -> (i32, i32) {
    %c0_i32 = arith.constant 0 : i32
    %c0_i32_0 = arith.constant 0 : i32
    return %c0_i32, %arg0 : i32, i32
  }
  func.func @transform_1(%arg0: i32) -> (i32, i32) {
    %c0_i32 = arith.constant 0 : i32
    %c0_i32_0 = arith.constant 0 : i32
    %c0_i32_1 = arith.constant 0 : i32
    return %c0_i32, %c0_i32_0 : i32, i32
  }
  func.func @transform_2(%arg0: i32) -> (i32, i32) {
    %c0_i32 = arith.constant 0 : i32
    %c0_i32_0 = arith.constant 0 : i32
    return %c0_i32, %arg0 : i32, i32
  }
}

</mosaic_0001>

<bundles_post_ra>
// kernel: tpu_custom_call.1
= control target key start
LH: loop header
LB: loop body
LE: loop exit
PB: predicated region body
PF: predicated region fallthrough
CT: control target
= control target key end

     0   :  { %7 = vsyncpa [#allocation3], 0  ;;  %s1823_s0 = inlined_call_operand.hbm [shape: bf16[147,1536], index: 0, kind: input, shape index: {}]   ;;  %s1824_s1 = inlined_call_operand.hbm [shape: bf16[8,147], index: 1, kind: input, shape index: {}]   ;;  %s1825_s2 = inlined_call_operand.hbm [shape: f32[1,1536], index: 2, kind: output, shape index: {}]  }
   0x1   :  { %8 = vsyncpa [#allocation6], 0 }
   0x2   :  { %9 = vsyncpa [#allocation4], 0  ;;  %s1704_s9 = smov [#allocation2]   ;;  %s1632_s13 = scalar_lea.hbm %s1823_s0, 14592 }
   0x3   :  { %s15_s10 = sshll.u32 %s1704_s9, 4  ;;  %p1633_p0 = scmp.ne.s32.totalorder %s1823_s0, %s1632_s13  ;;  %s16_s10 = int_to_ptr.vmem [resolvable:$true] %s15_s10 }
   0x4   :  { %p1636_p1 = scmp.lt.u32.totalorder %s1632_s13, %s1823_s0 }
   0x6   :  { %p1638_p2 = pnand %p1636_p1, %p1633_p0 }
   0x8   :  { %1641 = shalt.err (!%p1638_p2)
}
   0x9   :  { %s1642_s18 = scalar_lea.vmem %s16_s10, 14592  ;;  %p1647_p4 = scmp.lt.s32.totalorder %s16_s10, %s16_s10 }
   0xa   :  { %p1643_p3 = scmp.ne.s32.totalorder %s16_s10, %s1642_s18  ;;  %p1648_p5 = scmp.lt.s32.totalorder %s1642_s18, %s1642_s18 }
   0xc   :  { %p1649_p6 = por %p1648_p5, %p1647_p4 }
   0xe   :  { %p1650_p7 = pnand %p1649_p6, %p1643_p3 }
  0x10   :  { %1653 = shalt.err (!%p1650_p7)
}
  0x11   :  { %s1705_s19 = smov 768   ;;  %s1706_s20 = smov 48  }
  0x12   :  { %21 = dma.hbm_to_vmem [thread:$0]  %s1823_s0, 14592, %s16_s10, [#allocation3], %s1705_s19, %s1705_s19, %s1706_s20  }
  0x13   :  { %s1707_s23 = smov [#allocation5]   ;;  %s1654_s27 = scalar_lea.hbm %s1824_s1, 128 }
  0x14   :  { %s28_s24 = sshll.u32 %s1707_s23, 4  ;;  %p1655_p8 = scmp.ne.s32.totalorder %s1824_s1, %s1654_s27  ;;  %s29_s24 = int_to_ptr.vmem [resolvable:$true] %s28_s24 }
  0x15   :  { %p1658_p9 = scmp.lt.u32.totalorder %s1654_s27, %s1824_s1 }
  0x17   :  { %p1660_p10 = pnand %p1658_p9, %p1655_p8 }
  0x19   :  { %1663 = shalt.err (!%p1660_p10)
}
  0x1a   :  { %s1664_s4 = scalar_lea.vmem %s29_s24, 128  ;;  %p1669_p12 = scmp.lt.s32.totalorder %s29_s24, %s29_s24 }
  0x1b   :  { %p1665_p11 = scmp.ne.s32.totalorder %s29_s24, %s1664_s4  ;;  %p1670_p13 = scmp.lt.s32.totalorder %s1664_s4, %s1664_s4 }
  0x1d   :  { %p1671_p0 = por %p1670_p13, %p1669_p12 }
  0x1f   :  { %p1672_p1 = pnand %p1671_p0, %p1665_p11 }
  0x21   :  { %1675 = shalt.err (!%p1672_p1)
}
  0x22   :  { %31 = dma.hbm_to_vmem [thread:$0]  %s1824_s1, 128, %s29_s24, [#allocation6]  }
  0x23   :  { %1698 = dma.done.wait [#allocation3], 14592  }
  0x24   :  { %1699 = vsyncadd [#allocation3], 4294952704 }
  0x25   :  { %1700 = dma.done.wait [#allocation6], 128  }
  0x26   :  { %1701 = vsyncadd [#allocation6], 4294967168  ;;  %v1432_v0 = vld [vmem:[#allocation2 + $0x4] ss:$48 sps:$4 sm:$0xff]   ;;  %v1434_v1 = vld [vmem:[#allocation2 + $0xc] ss:$48 sps:$4 sm:$0xff]  }
  0x27   :  { %774 = vmatprep.subr.bf16.mxu0 %v1432_v0  ;;  %v1436_v2 = vld [vmem:[#allocation2] ss:$48 sps:$4 sm:$0xff]   ;;  %v1437_v3 = vld [vmem:[#allocation2 + $0x8] ss:$48 sps:$4 sm:$0xff]   ;;  %815 = vmatprep.subr.bf16.mxu1 %v1434_v1  ;;  %v1438_v4 = vld [vmem:[#allocation2 + $0x64] ss:$48 sps:$4 sm:$0xff]  }
  0x28   :  { %775 = vmatpush1.bf16.msra.mxu0 %v1436_v2  ;;  %816 = vmatpush1.bf16.msra.mxu1 %v1437_v3  ;;  %v1440_v5 = vld [vmem:[#allocation2 + $0x6c] ss:$48 sps:$4 sm:$0xff]   ;;  %v1442_v6 = vld [vmem:[#allocation2 + $0x60] ss:$48 sps:$4 sm:$0xff]   ;;  %v1443_v7 = vld [vmem:[#allocation2 + $0x68] ss:$48 sps:$4 sm:$0xff]  }
  0x29   :  { %776 = vmatprep.subr.bf16.mxu0 %v1438_v4  ;;  %817 = vmatprep.subr.bf16.mxu1 %v1440_v5  ;;  %v1444_v8 = vld [vmem:[#allocation2 + $0xc4] ss:$48 sps:$4 sm:$0xff]   ;;  %v1446_v9 = vld [vmem:[#allocation2 + $0xcc] ss:$48 sps:$4 sm:$0xff]   ;;  %v1448_v10 = vld [vmem:[#allocation2 + $0xc0] ss:$48 sps:$4 sm:$0xff]  }
  0x2a   :  { %v1449_v11 = vld [vmem:[#allocation2 + $0xc8] ss:$48 sps:$4 sm:$0xff]   ;;  %v1450_v12 = vld [vmem:[#allocation2 + $0x124] ss:$48 sps:$4 sm:$0xff]   ;;  %v1452_v13 = vld [vmem:[#allocation2 + $0x12c] ss:$48 sps:$4 sm:$0xff]  }
  0x2b   :  { %v1454_v14 = vld [vmem:[#allocation2 + $0x120] ss:$48 sps:$4 sm:$0xff]   ;;  %v1455_v15 = vld [vmem:[#allocation2 + $0x128] ss:$48 sps:$4 sm:$0xff]   ;;  %v1456_v16 = vld [vmem:[#allocation2 + $0x184] ss:$48 sps:$4 sm:$0xff]  }
  0x2c   :  { %777 = vmatpush1.bf16.msra.mxu0 %v1442_v6  ;;  %818 = vmatpush1.bf16.msra.mxu1 %v1443_v7  ;;  %v1458_v17 = vld [vmem:[#allocation2 + $0x18c] ss:$48 sps:$4 sm:$0xff]   ;;  %v1460_v18 = vld [vmem:[#allocation2 + $0x180] ss:$48 sps:$4 sm:$0xff]   ;;  %v1461_v19 = vld [vmem:[#allocation2 + $0x188] ss:$48 sps:$4 sm:$0xff]  }
  0x2d   :  { %778 = vmatprep.subr.bf16.mxu0 %v1444_v8  ;;  %819 = vmatprep.subr.bf16.mxu1 %v1446_v9  ;;  %v1462_v20 = vld [vmem:[#allocation2 + $0x1e4] ss:$48 sps:$4 sm:$0xff]   ;;  %v1464_v21 = vld [vmem:[#allocation2 + $0x1ec] ss:$48 sps:$4 sm:$0xff]   ;;  %v1466_v22 = vld [vmem:[#allocation2 + $0x1e0] ss:$48 sps:$4 sm:$0xff]  }
  0x2e   :  { %v1467_v23 = vld [vmem:[#allocation2 + $0x1e8] ss:$48 sps:$4 sm:$0xff]   ;;  %v1468_v24 = vld [vmem:[#allocation2 + $0x244] ss:$48 sps:$4 sm:$0xff]   ;;  %v1470_v25 = vld [vmem:[#allocation2 + $0x24c] ss:$48 sps:$4 sm:$0xff]  }
  0x2f   :  { %v1472_v26 = vld [vmem:[#allocation2 + $0x240] ss:$48 sps:$4 sm:$0xff]   ;;  %v1473_v27 = vld [vmem:[#allocation2 + $0x248] ss:$48 sps:$4 sm:$0xff]   ;;  %vm734_vm0 = vcmask 1040384   ;;  %vm735_vm1 = vcmask 1041408  }
  0x30   :  { %779 = vmatpush1.bf16.msra.mxu0 %v1448_v10  ;;  %820 = vmatpush1.bf16.msra.mxu1 %v1449_v11  ;;  %v1474_v28 = vld [vmem:[#allocation2 + $0x2a4] ss:$48 sps:$4 sm:$0xff]   ;;  %v1476_v29 = vld [vmem:[#allocation2 + $0x2ac] ss:$48 sps:$4 sm:$0xff]   ;;  %v1478_v34 = vld [vmem:[#allocation2 + $0x2a0] ss:$48 sps:$4 sm:$0xff]  }
  0x31   :  { %780 = vmatprep.subr.bf16.mxu0 %v1450_v12  ;;  %821 = vmatprep.subr.bf16.mxu1 %v1452_v13  ;;  %v39_v30 = vld [vmem:[#allocation5] sm:$0xff]  ;;  %v148_v31 = vld [vmem:[#allocation2 + $0x360] sm:$0x33]  ;;  %v149_v32 = vld [vmem:[#allocation2 + $0x368] sm:$0x33]  ;;  %v1708_v35 = vmov 65535  }
  0x32   :  { %v1750_v33 = vcombine.high %v39_v30, %v39_v30  ;;  %v736_v36 = vsel %vm734_vm0, 4294967295, %v1708_v35  ;;  %vm730_vm2 = vcmask 154624   ;;  %v1479_v37 = vld [vmem:[#allocation2 + $0x2a8] ss:$48 sps:$4 sm:$0xff]   ;;  %v1480_v38 = vld [vmem:[#allocation2 + $0x304] ss:$48 sps:$4 sm:$0xff]   ;;  %v1408_v40 = vcombine.high %v148_v31, %v148_v31 }
  0x33   :  { %v1482_v39 = vld [vmem:[#allocation2 + $0x30c] ss:$48 sps:$4 sm:$0xff]   ;;  %v1410_v41 = vcombine.high %v149_v32, %v149_v32  ;;  %v1752_v42 = vsel %vm735_vm1, %v736_v36, 0  ;;  %v1484_v43 = vld [vmem:[#allocation2 + $0x300] ss:$48 sps:$4 sm:$0xff]   ;;  %v1407_v45 = vcombine.low %v148_v31, %v148_v31  ;;  %v1409_v46 = vcombine.low %v149_v32, %v149_v32  ;;  %s1710_s1 = smov [#allocation7]  }
  0x34   :  { %781 = vmatpush1.bf16.msra.mxu0 %v1454_v14  ;;  %822 = vmatpush1.bf16.msra.mxu1 %v1455_v15  ;;  %v1485_v44 = vld [vmem:[#allocation2 + $0x308] ss:$48 sps:$4 sm:$0xff]   ;;  %v742_v47 = vand.u32 %v1408_v40, %v1752_v42  ;;  %v1494_v51 = vld [vmem:[#allocation2 + $0x14] ss:$48 sps:$4 sm:$0xff]   ;;  %v1497_v52 = vld [vmem:[#allocation2 + $0x1c] ss:$48 sps:$4 sm:$0xff]   ;;  %v1762_v53 = vcombine.low %v39_v30, %v39_v30 }
  0x35   :  { %782 = vmatprep.subr.bf16.mxu0 %v1456_v16  ;;  %823 = vmatprep.subr.bf16.mxu1 %v1458_v17  ;;  %v748_v48 = vand.u32 %v1410_v41, %v1752_v42  ;;  %v739_v49 = vand.u32 %v1407_v45, %v1752_v42  ;;  %v745_v50 = vand.u32 %v1409_v46, %v1752_v42  ;;  %v1492_v54 = vld [vmem:[#allocation2 + $0x10] ss:$48 sps:$4 sm:$0xff]   ;;  %v1495_v55 = vld [vmem:[#allocation2 + $0x18] ss:$48 sps:$4 sm:$0xff]   ;;  %v1500_v56 = vld [vmem:[#allocation2 + $0x74] ss:$48 sps:$4 sm:$0xff]  }
  0x36   :  { %1419 = vmatprep.mubr.msk.bf16.mxu0 %vm730_vm2, %v1750_v33  ;;  %1420 = vmatprep.mubr.msk.bf16.mxu1 %vm730_vm2, %v1750_v33  ;;  %v1503_v57 = vld [vmem:[#allocation2 + $0x7c] ss:$48 sps:$4 sm:$0xff]   ;;  %v1498_v58 = vld [vmem:[#allocation2 + $0x70] ss:$48 sps:$4 sm:$0xff]   ;;  %v1501_v59 = vld [vmem:[#allocation2 + $0x78] ss:$48 sps:$4 sm:$0xff]  }
  0x37   :  { %v1506_v60 = vld [vmem:[#allocation2 + $0xd4] ss:$48 sps:$4 sm:$0xff]   ;;  %v1509_v61 = vld [vmem:[#allocation2 + $0xdc] ss:$48 sps:$4 sm:$0xff]   ;;  %v1504_v62 = vld [vmem:[#allocation2 + $0xd0] ss:$48 sps:$4 sm:$0xff]  }
  0x38   :  { %783 = vmatpush1.bf16.msra.mxu0 %v1460_v18  ;;  %824 = vmatpush1.bf16.msra.mxu1 %v1461_v19  ;;  %v1507_v63 = vld [vmem:[#allocation2 + $0xd8] ss:$48 sps:$4 sm:$0xff]   ;;  %v1512_v0 = vld [vmem:[#allocation2 + $0x134] ss:$48 sps:$4 sm:$0xff]   ;;  %v1515_v1 = vld [vmem:[#allocation2 + $0x13c] ss:$48 sps:$4 sm:$0xff]  }
  0x39   :  { %784 = vmatprep.subr.bf16.mxu0 %v1462_v20  ;;  %825 = vmatprep.subr.bf16.mxu1 %v1464_v21  ;;  %v1510_v2 = vld [vmem:[#allocation2 + $0x130] ss:$48 sps:$4 sm:$0xff]   ;;  %v1513_v3 = vld [vmem:[#allocation2 + $0x138] ss:$48 sps:$4 sm:$0xff]   ;;  %v1518_v4 = vld [vmem:[#allocation2 + $0x194] ss:$48 sps:$4 sm:$0xff]  }
  0x3a   :  { %v1521_v5 = vld [vmem:[#allocation2 + $0x19c] ss:$48 sps:$4 sm:$0xff]   ;;  %v1516_v6 = vld [vmem:[#allocation2 + $0x190] ss:$48 sps:$4 sm:$0xff]   ;;  %v1519_v7 = vld [vmem:[#allocation2 + $0x198] ss:$48 sps:$4 sm:$0xff]  }
  0x3b   :  { %v1524_v8 = vld [vmem:[#allocation2 + $0x1f4] ss:$48 sps:$4 sm:$0xff]   ;;  %v1527_v9 = vld [vmem:[#allocation2 + $0x1fc] ss:$48 sps:$4 sm:$0xff]   ;;  %v1522_v10 = vld [vmem:[#allocation2 + $0x1f0] ss:$48 sps:$4 sm:$0xff]  }
  0x3c   :  { %785 = vmatpush1.bf16.msra.mxu0 %v1466_v22  ;;  %826 = vmatpush1.bf16.msra.mxu1 %v1467_v23  ;;  %v1525_v11 = vld [vmem:[#allocation2 + $0x1f8] ss:$48 sps:$4 sm:$0xff]   ;;  %v1530_v12 = vld [vmem:[#allocation2 + $0x254] ss:$48 sps:$4 sm:$0xff]   ;;  %v1533_v13 = vld [vmem:[#allocation2 + $0x25c] ss:$48 sps:$4 sm:$0xff]  }
  0x3d   :  { %786 = vmatprep.subr.bf16.mxu0 %v1468_v24  ;;  %827 = vmatprep.subr.bf16.mxu1 %v1470_v25  ;;  %v1528_v14 = vld [vmem:[#allocation2 + $0x250] ss:$48 sps:$4 sm:$0xff]   ;;  %v1531_v15 = vld [vmem:[#allocation2 + $0x258] ss:$48 sps:$4 sm:$0xff]   ;;  %v1536_v16 = vld [vmem:[#allocation2 + $0x2b4] ss:$48 sps:$4 sm:$0xff]  }
  0x3e   :  { %v1539_v17 = vld [vmem:[#allocation2 + $0x2bc] ss:$48 sps:$4 sm:$0xff]   ;;  %v150_v18 = vld [vmem:[#allocation2 + $0x370] sm:$0x33]  ;;  %v1537_v21 = vld [vmem:[#allocation2 + $0x2b8] ss:$48 sps:$4 sm:$0xff]  }
  0x3f   :  { %v151_v19 = vld [vmem:[#allocation2 + $0x378] sm:$0x33]  ;;  %v1534_v20 = vld [vmem:[#allocation2 + $0x2b0] ss:$48 sps:$4 sm:$0xff]   ;;  %v1542_v22 = vld [vmem:[#allocation2 + $0x314] ss:$48 sps:$4 sm:$0xff]   ;;  %v1412_v24 = vcombine.high %v150_v18, %v150_v18 }
  0x40   :  { %787 = vmatpush1.bf16.msra.mxu0 %v1472_v26  ;;  %828 = vmatpush1.bf16.msra.mxu1 %v1473_v27  ;;  %v1545_v23 = vld [vmem:[#allocation2 + $0x31c] ss:$48 sps:$4 sm:$0xff]   ;;  %v1414_v25 = vcombine.high %v151_v19, %v151_v19  ;;  %v1540_v26 = vld [vmem:[#allocation2 + $0x310] ss:$48 sps:$4 sm:$0xff]   ;;  %v1543_v27 = vld [vmem:[#allocation2 + $0x318] ss:$48 sps:$4 sm:$0xff]  }
  0x41   :  { %788 = vmatprep.subr.bf16.mxu0 %v1474_v28  ;;  %829 = vmatprep.subr.bf16.mxu1 %v1476_v29  ;;  %v1411_v28 = vcombine.low %v150_v18, %v150_v18  ;;  %v1413_v29 = vcombine.low %v151_v19, %v151_v19  ;;  %v754_v30 = vand.u32 %v1412_v24, %v1752_v42  ;;  %v1552_v35 = vld [vmem:[#allocation2 + $0x24] ss:$48 sps:$4 sm:$0xff]   ;;  %v1555_v36 = vld [vmem:[#allocation2 + $0x2c] ss:$48 sps:$4 sm:$0xff]   ;;  %v1556_v41 = vld [vmem:[#allocation2 + $0x80] ss:$48 sps:$4 sm:$0xff]  }
  0x42   :  { %v760_v31 = vand.u32 %v1414_v25, %v1752_v42  ;;  %v1561_v40 = vld [vmem:[#allocation2 + $0x8c] ss:$48 sps:$4 sm:$0xff]   ;;  %v1562_v46 = vld [vmem:[#allocation2 + $0xe0] ss:$48 sps:$4 sm:$0xff]   ;;  %s1287_s6 = sshll.u32 %s1710_s1, 4  ;;  %s1288_s6 = int_to_ptr.vmem [resolvable:$true] %s1287_s6 }
  0x43   :  { %v751_v32 = vand.u32 %v1411_v28, %v1752_v42  ;;  %v1567_v45 = vld [vmem:[#allocation2 + $0xec] ss:$48 sps:$4 sm:$0xff]   ;;  %s1676_s7 = scalar_lea.vmem %s1288_s6, 192  ;;  %p1681_p3 = scmp.lt.s32.totalorder %s1288_s6, %s1288_s6 }
  0x44   :  { %789 = vmatpush1.bf16.msra.mxu0 %v1478_v34  ;;  %830 = vmatpush1.bf16.msra.mxu1 %v1479_v37  ;;  %v757_v34 = vand.u32 %v1413_v29, %v1752_v42  ;;  %v1550_v37 = vld [vmem:[#allocation2 + $0x20] ss:$48 sps:$4 sm:$0xff]   ;;  %p1677_p2 = scmp.ne.s32.totalorder %s1288_s6, %s1676_s7  ;;  %p1682_p4 = scmp.lt.s32.totalorder %s1676_s7, %s1676_s7 }
  0x45   :  { %790 = vmatprep.subr.bf16.mxu0 %v1480_v38  ;;  %831 = vmatprep.subr.bf16.mxu1 %v1482_v39  ;;  %v1553_v38 = vld [vmem:[#allocation2 + $0x28] ss:$48 sps:$4 sm:$0xff]   ;;  %v1558_v39 = vld [vmem:[#allocation2 + $0x84] ss:$48 sps:$4 sm:$0xff]  }
  0x46   :  { %p1683_p5 = por %p1682_p4, %p1681_p3 }
  0x48   :  { %791 = vmatpush1.bf16.msra.mxu0 %v1484_v43  ;;  %832 = vmatpush1.bf16.msra.mxu1 %v1485_v44  ;;  %v1559_v43 = vld [vmem:[#allocation2 + $0x88] ss:$48 sps:$4 sm:$0xff]   ;;  %v1564_v44 = vld [vmem:[#allocation2 + $0xe4] ss:$48 sps:$4 sm:$0xff]   ;;  %p1684_p6 = pnand %p1683_p5, %p1677_p2 }
  0x49   :  { %792 = vmatprep.subr.bf16.mxu0 %v742_v47  ;;  %833 = vmatprep.subr.bf16.mxu1 %v748_v48  ;;  %v1565_v47 = vld [vmem:[#allocation2 + $0xe8] ss:$48 sps:$4 sm:$0xff]   ;;  %v1570_v48 = vld [vmem:[#allocation2 + $0x144] ss:$48 sps:$4 sm:$0xff]  }
  0x4c   :  { %793 = vmatpush1.bf16.msra.mxu0 %v739_v49  ;;  %834 = vmatpush1.bf16.msra.mxu1 %v745_v50  ;;  %v1573_v49 = vld [vmem:[#allocation2 + $0x14c] ss:$48 sps:$4 sm:$0xff]   ;;  %v1568_v50 = vld [vmem:[#allocation2 + $0x140] ss:$48 sps:$4 sm:$0xff]  }
  0x4d   :  { %856 = vmatprep.subr.bf16.mxu0 %v1494_v51  ;;  %897 = vmatprep.subr.bf16.mxu1 %v1497_v52  ;;  %v1571_v51 = vld [vmem:[#allocation2 + $0x148] ss:$48 sps:$4 sm:$0xff]   ;;  %v1576_v52 = vld [vmem:[#allocation2 + $0x1a4] ss:$48 sps:$4 sm:$0xff]  }
  0x4f   :  { %807 = vmatmul.mubr.bf16.vlgmr.msra.gmra.mrb[0].mxu0 %v1762_v53  ;;  %848 = vmatmul.mubr.bf16.vlgmr.msra.gmra.mrb[0].mxu1 %v1762_v53 }
  0x50   :  { %857 = vmatpush1.bf16.msra.mxu0 %v1492_v54  ;;  %898 = vmatpush1.bf16.msra.mxu1 %v1495_v55  ;;  %v1579_v54 = vld [vmem:[#allocation2 + $0x1ac] ss:$48 sps:$4 sm:$0xff]   ;;  %v1574_v55 = vld [vmem:[#allocation2 + $0x1a0] ss:$48 sps:$4 sm:$0xff]  }
  0x51   :  { %858 = vmatprep.subr.bf16.mxu0 %v1500_v56  ;;  %899 = vmatprep.subr.bf16.mxu1 %v1503_v57  ;;  %v1582_v56 = vld [vmem:[#allocation2 + $0x204] ss:$48 sps:$4 sm:$0xff]   ;;  %v1585_v57 = vld [vmem:[#allocation2 + $0x20c] ss:$48 sps:$4 sm:$0xff]  }
  0x52   :  { %1421 = vmatprep.mubr.msk.bf16.mxu0 %vm730_vm2, %v1750_v33  ;;  %1422 = vmatprep.mubr.msk.bf16.mxu1 %vm730_vm2, %v1750_v33 }
  0x54   :  { %859 = vmatpush1.bf16.msra.mxu0 %v1498_v58  ;;  %900 = vmatpush1.bf16.msra.mxu1 %v1501_v59  ;;  %v1580_v58 = vld [vmem:[#allocation2 + $0x200] ss:$48 sps:$4 sm:$0xff]   ;;  %v1583_v59 = vld [vmem:[#allocation2 + $0x208] ss:$48 sps:$4 sm:$0xff]  }
  0x55   :  { %860 = vmatprep.subr.bf16.mxu0 %v1506_v60  ;;  %901 = vmatprep.subr.bf16.mxu1 %v1509_v61  ;;  %v1588_v60 = vld [vmem:[#allocation2 + $0x264] ss:$48 sps:$4 sm:$0xff]   ;;  %v1591_v61 = vld [vmem:[#allocation2 + $0x26c] ss:$48 sps:$4 sm:$0xff]  }
  0x58   :  { %861 = vmatpush1.bf16.msra.mxu0 %v1504_v62  ;;  %902 = vmatpush1.bf16.msra.mxu1 %v1507_v63  ;;  %v1586_v62 = vld [vmem:[#allocation2 + $0x260] ss:$48 sps:$4 sm:$0xff]   ;;  %v1589_v63 = vld [vmem:[#allocation2 + $0x268] ss:$48 sps:$4 sm:$0xff]  }
  0x59   :  { %862 = vmatprep.subr.bf16.mxu0 %v1512_v0  ;;  %903 = vmatprep.subr.bf16.mxu1 %v1515_v1  ;;  %v1594_v0 = vld [vmem:[#allocation2 + $0x2c4] ss:$48 sps:$4 sm:$0xff]   ;;  %v1597_v1 = vld [vmem:[#allocation2 + $0x2cc] ss:$48 sps:$4 sm:$0xff]  }
  0x5c   :  { %863 = vmatpush1.bf16.msra.mxu0 %v1510_v2  ;;  %904 = vmatpush1.bf16.msra.mxu1 %v1513_v3  ;;  %v152_v2 = vld [vmem:[#allocation2 + $0x380] sm:$0x33]  ;;  %v153_v3 = vld [vmem:[#allocation2 + $0x388] sm:$0x33] }
  0x5d   :  { %864 = vmatprep.subr.bf16.mxu0 %v1518_v4  ;;  %905 = vmatprep.subr.bf16.mxu1 %v1521_v5  ;;  %v1592_v4 = vld [vmem:[#allocation2 + $0x2c0] ss:$48 sps:$4 sm:$0xff]   ;;  %v1595_v5 = vld [vmem:[#allocation2 + $0x2c8] ss:$48 sps:$4 sm:$0xff]  }
  0x60   :  { %865 = vmatpush1.bf16.msra.mxu0 %v1516_v6  ;;  %906 = vmatpush1.bf16.msra.mxu1 %v1519_v7  ;;  %v1600_v6 = vld [vmem:[#allocation2 + $0x324] ss:$48 sps:$4 sm:$0xff]   ;;  %v1603_v7 = vld [vmem:[#allocation2 + $0x32c] ss:$48 sps:$4 sm:$0xff]  }
  0x61   :  { %866 = vmatprep.subr.bf16.mxu0 %v1524_v8  ;;  %907 = vmatprep.subr.bf16.mxu1 %v1527_v9  ;;  %v1416_v8 = vcombine.high %v152_v2, %v152_v2  ;;  %v1418_v9 = vcombine.high %v153_v3, %v153_v3 }
  0x64   :  { %867 = vmatpush1.bf16.msra.mxu0 %v1522_v10  ;;  %908 = vmatpush1.bf16.msra.mxu1 %v1525_v11  ;;  %v1598_v10 = vld [vmem:[#allocation2 + $0x320] ss:$48 sps:$4 sm:$0xff]   ;;  %v1601_v11 = vld [vmem:[#allocation2 + $0x328] ss:$48 sps:$4 sm:$0xff]  }
  0x65   :  { %868 = vmatprep.subr.bf16.mxu0 %v1530_v12  ;;  %909 = vmatprep.subr.bf16.mxu1 %v1533_v13  ;;  %v1415_v12 = vcombine.low %v152_v2, %v152_v2  ;;  %v1417_v13 = vcombine.low %v153_v3, %v153_v3 }
  0x68   :  { %869 = vmatpush1.bf16.msra.mxu0 %v1528_v14  ;;  %910 = vmatpush1.bf16.msra.mxu1 %v1531_v15  ;;  %v766_v14 = vand.u32 %v1416_v8, %v1752_v42  ;;  %v772_v15 = vand.u32 %v1418_v9, %v1752_v42 }
  0x69   :  { %870 = vmatprep.subr.bf16.mxu0 %v1536_v16  ;;  %911 = vmatprep.subr.bf16.mxu1 %v1539_v17  ;;  %v763_v16 = vand.u32 %v1415_v12, %v1752_v42  ;;  %v769_v17 = vand.u32 %v1417_v13, %v1752_v42 }
  0x6c   :  { %871 = vmatpush1.bf16.msra.mxu0 %v1534_v20  ;;  %912 = vmatpush1.bf16.msra.mxu1 %v1537_v21 }
  0x6d   :  { %872 = vmatprep.subr.bf16.mxu0 %v1542_v22  ;;  %913 = vmatprep.subr.bf16.mxu1 %v1545_v23 }
  0x70   :  { %873 = vmatpush1.bf16.msra.mxu0 %v1540_v26  ;;  %914 = vmatpush1.bf16.msra.mxu1 %v1543_v27 }
  0x71   :  { %874 = vmatprep.subr.bf16.mxu0 %v754_v30  ;;  %915 = vmatprep.subr.bf16.mxu1 %v760_v31 }
  0x74   :  { %875 = vmatpush1.bf16.msra.mxu0 %v751_v32  ;;  %916 = vmatpush1.bf16.msra.mxu1 %v757_v34 }
  0x75   :  { %938 = vmatprep.subr.bf16.mxu0 %v1552_v35  ;;  %979 = vmatprep.subr.bf16.mxu1 %v1555_v36 }
  0x77   :  { %889 = vmatmul.mubr.bf16.vlgmr.msra.gmra.mrb[4].mxu0 %v1762_v53  ;;  %930 = vmatmul.mubr.bf16.vlgmr.msra.gmra.mrb[4].mxu1 %v1762_v53 }
  0x78   :  { %939 = vmatpush1.bf16.msra.mxu0 %v1550_v37  ;;  %980 = vmatpush1.bf16.msra.mxu1 %v1553_v38 }
  0x79   :  { %940 = vmatprep.subr.bf16.mxu0 %v1558_v39  ;;  %981 = vmatprep.subr.bf16.mxu1 %v1561_v40 }
  0x7a   :  { %1423 = vmatprep.mubr.msk.bf16.mxu0 %vm730_vm2, %v1750_v33  ;;  %1424 = vmatprep.mubr.msk.bf16.mxu1 %vm730_vm2, %v1750_v33  ;;  %v1577_v33 = vld [vmem:[#allocation2 + $0x1a8] ss:$48 sps:$4 sm:$0xff]  }
  0x7c   :  { %941 = vmatpush1.bf16.msra.mxu0 %v1556_v41  ;;  %982 = vmatpush1.bf16.msra.mxu1 %v1559_v43 }
  0x7d   :  { %942 = vmatprep.subr.bf16.mxu0 %v1564_v44  ;;  %983 = vmatprep.subr.bf16.mxu1 %v1567_v45 }
  0x80   :  { %943 = vmatpush1.bf16.msra.mxu0 %v1562_v46  ;;  %984 = vmatpush1.bf16.msra.mxu1 %v1565_v47 }
  0x81   :  { %944 = vmatprep.subr.bf16.mxu0 %v1570_v48  ;;  %985 = vmatprep.subr.bf16.mxu1 %v1573_v49 }
  0x84   :  { %945 = vmatpush1.bf16.msra.mxu0 %v1568_v50  ;;  %986 = vmatpush1.bf16.msra.mxu1 %v1571_v51 }
  0x85   :  { %946 = vmatprep.subr.bf16.mxu0 %v1576_v52  ;;  %987 = vmatprep.subr.bf16.mxu1 %v1579_v54 }
  0x88   :  { %947 = vmatpush1.bf16.msra.mxu0 %v1574_v55  ;;  %988 = vmatpush1.bf16.msra.mxu1 %v1577_v33 }
  0x89   :  { %948 = vmatprep.subr.bf16.mxu0 %v1582_v56  ;;  %989 = vmatprep.subr.bf16.mxu1 %v1585_v57 }
  0x8c   :  { %949 = vmatpush1.bf16.msra.mxu0 %v1580_v58  ;;  %990 = vmatpush1.bf16.msra.mxu1 %v1583_v59  ;;  %v1709_v58 = vmov 1966171168  }
  0x8d   :  { %950 = vmatprep.subr.bf16.mxu0 %v1588_v60  ;;  %991 = vmatprep.subr.bf16.mxu1 %v1591_v61  ;;  %v1205_v59 = vunpack.c.l.s4 %v1709_v58  ;;  %v1207_v60 = vlaneseq }
  0x8f   :  { %v1206_v61 = vunpack.c.0.s8 %v1205_v59 }
  0x90   :  { %951 = vmatpush1.bf16.msra.mxu0 %v1586_v62  ;;  %992 = vmatpush1.bf16.msra.mxu1 %v1589_v63  ;;  %v1208_v62 = vshrl.u32 %v1207_v60, 7 }
  0x91   :  { %952 = vmatprep.subr.bf16.mxu0 %v1594_v0  ;;  %993 = vmatprep.subr.bf16.mxu1 %v1597_v1 }
  0x92   :  { %v1787_v0 = vsub.s32 %v1206_v61, %v1208_v62 }
  0x94   :  { %953 = vmatpush1.bf16.msra.mxu0 %v1592_v4  ;;  %994 = vmatpush1.bf16.msra.mxu1 %v1595_v5 }
  0x95   :  { %954 = vmatprep.subr.bf16.mxu0 %v1600_v6  ;;  %995 = vmatprep.subr.bf16.mxu1 %v1603_v7 }
  0x98   :  { %955 = vmatpush1.bf16.msra.mxu0 %v1598_v10  ;;  %996 = vmatpush1.bf16.msra.mxu1 %v1601_v11 }
  0x99   :  { %956 = vmatprep.subr.bf16.mxu0 %v766_v14  ;;  %997 = vmatprep.subr.bf16.mxu1 %v772_v15 }
  0x9c   :  { %957 = vmatpush1.bf16.msra.mxu0 %v763_v16  ;;  %998 = vmatpush1.bf16.msra.mxu1 %v769_v17 }
  0x9f   :  { %971 = vmatmul.mubr.bf16.vlgmr.msra.gmra.mrb[8].mxu0 %v1762_v53  ;;  %1012 = vmatmul.mubr.bf16.vlgmr.msra.gmra.mrb[8].mxu1 %v1762_v53 }
 0x122   :  { %v808_v18 = vpop.f32.mrb[0].mxu0  ;;  %v849_v19 = vpop.f32.mrb[0].mxu1 }
 0x123   :  { %v809_v20 = vadd.f32 1e-06, %v808_v18  ;;  %v850_v21 = vadd.f32 1e-06, %v849_v19  ;;  %v810_v22 = vpop.f32.mrb[1].mxu0  ;;  %v851_v23 = vpop.f32.mrb[1].mxu1 }
 0x124   :  { %v811_v24 = vadd.f32 1e-06, %v810_v22  ;;  %v852_v25 = vadd.f32 1e-06, %v851_v23  ;;  %v812_v26 = vpop.f32.mrb[2].mxu0  ;;  %v853_v27 = vpop.f32.mrb[2].mxu1 }
 0x125   :  { %v1020_v28 = vmul.f32 %v809_v20, %v809_v20  ;;  %v1022_v42 = vmul.f32 %v850_v21, %v850_v21  ;;  %v813_v29 = vpop.f32.mrb[3].mxu0  ;;  %v854_v30 = vpop.f32.mrb[3].mxu1 }
 0x126   :  { %v1021_v31 = vmul.f32 %v811_v24, %v811_v24  ;;  %v1023_v32 = vmul.f32 %v852_v25, %v852_v25 }
 0x127   :  { %v1032_v34 = vrot.slane %v1020_v28, 4  ;;  %v1044_v35 = vrot.slane %v1022_v42, 4 }
 0x128   :  { %v1038_v36 = vrot.slane %v1021_v31, 4  ;;  %v1050_v53 = vrot.slane %v1023_v32, 4 }
 0x129   :  { %v1033_v37 = vadd.f32 %v1032_v34, %v1020_v28  ;;  %v1045_v38 = vadd.f32 %v1044_v35, %v1022_v42 }
 0x12a   :  { %v1039_v39 = vadd.f32 %v1038_v36, %v1021_v31  ;;  %v1051_v40 = vadd.f32 %v1050_v53, %v1023_v32 }
 0x12b   :  { %v1034_v41 = vrot.slane %v1033_v37, 2  ;;  %v1046_v43 = vrot.slane %v1045_v38, 2 }
 0x12c   :  { %v1040_v44 = vrot.slane %v1039_v39, 2  ;;  %v1052_v45 = vrot.slane %v1051_v40, 2 }
 0x12d   :  { %v1035_v46 = vadd.f32 %v1034_v41, %v1033_v37  ;;  %v1047_v47 = vadd.f32 %v1046_v43, %v1045_v38 }
 0x12e   :  { %v1041_v48 = vadd.f32 %v1040_v44, %v1039_v39  ;;  %v1053_v49 = vadd.f32 %v1052_v45, %v1051_v40 }
 0x12f   :  { %v1036_v50 = vrot.slane %v1035_v46, 1  ;;  %v1048_v51 = vrot.slane %v1047_v47, 1 }
 0x130   :  { %v1042_v52 = vrot.slane %v1041_v48, 1  ;;  %v1054_v54 = vrot.slane %v1053_v49, 1 }
 0x131   :  { %v1037_v55 = vadd.f32 %v1036_v50, %v1035_v46  ;;  %v1049_v33 = vadd.f32 %v1048_v51, %v1047_v47 }
 0x132   :  { %v1043_v56 = vadd.f32 %v1042_v52, %v1041_v48  ;;  %v1055_v57 = vadd.f32 %v1054_v54, %v1053_v49 }
 0x133   :  { %1608 = vrsqrt.f32 %v1037_v55  ;;  %vm1106_vm3 = vcmp.eq.f32.partialorder %v1037_v55, inf  ;;  %vm1108_vm4 = vcmp.eq.f32.partialorder %v1037_v55, 0.0  ;;  %v1109_v3 = vand.u32 2147483648, %v1037_v55 }
 0x134   :  { %1610 = vrsqrt.f32 %v1049_v33  ;;  %vm1113_vm5 = vcmp.eq.f32.partialorder %v1043_v56, inf  ;;  %vm1115_vm6 = vcmp.eq.f32.partialorder %v1043_v56, 0.0  ;;  %v1116_v5 = vand.u32 2147483648, %v1043_v56 }
 0x135   :  { %1612 = vrsqrt.f32 %v1043_v56  ;;  %vm1120_vm7 = vcmp.eq.f32.partialorder %v1049_v33, inf  ;;  %v1123_v10 = vand.u32 2147483648, %v1049_v33  ;;  %vm1122_vm8 = vcmp.eq.f32.partialorder %v1049_v33, 0.0 }
 0x136   :  { %1614 = vrsqrt.f32 %v1055_v57  ;;  %vm1127_vm9 = vcmp.eq.f32.partialorder %v1055_v57, inf  ;;  %v1130_v16 = vand.u32 2147483648, %v1055_v57  ;;  %vm1129_vm10 = vcmp.eq.f32.partialorder %v1055_v57, 0.0 }
 0x13d   :  { %v1609_v63 = vpop.eup %1608 }
 0x13e   :  { %v1611_v1 = vpop.eup %1610  ;;  %v1105_v2 = vmul.f32 %v1609_v63, %v1037_v55 }
 0x13f   :  { %v1613_v4 = vpop.eup %1612  ;;  %v1119_v6 = vmul.f32 %v1611_v1, %v1049_v33 }
 0x140   :  { %v1615_v7 = vpop.eup %1614  ;;  %v1107_v8 = vsel %vm1106_vm3, %v1037_v55, %v1105_v2  ;;  %v1112_v9 = vmul.f32 %v1613_v4, %v1043_v56 }
 0x141   :  { %v1110_v11 = vsel %vm1108_vm4, %v1109_v3, %v1107_v8  ;;  %v1121_v12 = vsel %vm1120_vm7, %v1049_v33, %v1119_v6  ;;  %v1126_v13 = vmul.f32 %v1615_v7, %v1055_v57 }
 0x142   :  { %v1114_v14 = vsel %vm1113_vm5, %v1043_v56, %v1112_v9  ;;  %v1124_v15 = vsel %vm1122_vm8, %v1123_v10, %v1121_v12 }
 0x143   :  { %v1117_v17 = vsel %vm1115_vm6, %v1116_v5, %v1114_v14  ;;  %v1128_v18 = vsel %vm1127_vm9, %v1055_v57, %v1126_v13 }
 0x144   :  { %v1131_v19 = vsel %vm1129_vm10, %v1130_v16, %v1128_v18  ;;  %v1200_v20 = vcombine.low %v1110_v11, %v1117_v17 }
 0x145   :  { %v1201_v21 = vcombine.low %v1124_v15, %v1131_v19 }
 0x146   :  { %v1791_v22 = vrot.slane %v1200_v20, %v1787_v0 }
 0x147   :  { %v1794_v23 = vrot.slane %v1201_v21, %v1787_v0 }
 0x149   :  { %v1232_v24 = vcombine.low %v1791_v22, %v1794_v23 }
 0x14a   :  { %v890_v25 = vpop.f32.mrb[4].mxu0  ;;  %v931_v26 = vpop.f32.mrb[4].mxu1 }
 0x14b   :  { %v891_v27 = vadd.f32 1e-06, %v890_v25  ;;  %v932_v28 = vadd.f32 1e-06, %v931_v26  ;;  %v892_v42 = vpop.f32.mrb[5].mxu0  ;;  %v933_v29 = vpop.f32.mrb[5].mxu1 }
 0x14c   :  { %v893_v30 = vadd.f32 1e-06, %v892_v42  ;;  %v934_v31 = vadd.f32 1e-06, %v933_v29  ;;  %v894_v32 = vpop.f32.mrb[6].mxu0  ;;  %v935_v34 = vpop.f32.mrb[6].mxu1 }
 0x14d   :  { %v1024_v35 = vmul.f32 %v891_v27, %v891_v27  ;;  %v1026_v36 = vmul.f32 %v932_v28, %v932_v28  ;;  %v895_v53 = vpop.f32.mrb[7].mxu0  ;;  %v936_v37 = vpop.f32.mrb[7].mxu1 }
 0x14e   :  { %v1025_v38 = vmul.f32 %v893_v30, %v893_v30  ;;  %v1027_v39 = vmul.f32 %v934_v31, %v934_v31  ;;  %v1240_v53 = vrot.slane %v1232_v24, %v1787_v0 }
 0x14f   :  { %v1056_v40 = vrot.slane %v1024_v35, 4  ;;  %v1068_v41 = vrot.slane %v1026_v36, 4 }
 0x150   :  { %v1062_v43 = vrot.slane %v1025_v38, 4  ;;  %v1074_v44 = vrot.slane %v1027_v39, 4 }
 0x151   :  { %v1057_v45 = vadd.f32 %v1056_v40, %v1024_v35  ;;  %v1069_v46 = vadd.f32 %v1068_v41, %v1026_v36 }
 0x152   :  { %v1063_v47 = vadd.f32 %v1062_v43, %v1025_v38  ;;  %v1075_v48 = vadd.f32 %v1074_v44, %v1027_v39 }
 0x153   :  { %v1058_v49 = vrot.slane %v1057_v45, 2  ;;  %v1070_v50 = vrot.slane %v1069_v46, 2 }
 0x154   :  { %v1064_v51 = vrot.slane %v1063_v47, 2  ;;  %v1076_v52 = vrot.slane %v1075_v48, 2 }
 0x155   :  { %v1059_v54 = vadd.f32 %v1058_v49, %v1057_v45  ;;  %v1071_v55 = vadd.f32 %v1070_v50, %v1069_v46 }
 0x156   :  { %v1065_v33 = vadd.f32 %v1064_v51, %v1063_v47  ;;  %v1077_v56 = vadd.f32 %v1076_v52, %v1075_v48 }
 0x157   :  { %v1060_v57 = vrot.slane %v1059_v54, 1  ;;  %v1072_v58 = vrot.slane %v1071_v55, 1 }
 0x158   :  { %v1066_v59 = vrot.slane %v1065_v33, 1  ;;  %v1078_v61 = vrot.slane %v1077_v56, 1 }
 0x159   :  { %v1061_v62 = vadd.f32 %v1060_v57, %v1059_v54  ;;  %v1073_v63 = vadd.f32 %v1072_v58, %v1071_v55 }
 0x15a   :  { %v1067_v1 = vadd.f32 %v1066_v59, %v1065_v33  ;;  %v1079_v2 = vadd.f32 %v1078_v61, %v1077_v56 }
 0x15b   :  { %1616 = vrsqrt.f32 %v1061_v62  ;;  %vm1134_vm11 = vcmp.eq.f32.partialorder %v1061_v62, inf  ;;  %vm1136_vm12 = vcmp.eq.f32.partialorder %v1061_v62, 0.0  ;;  %v1137_v6 = vand.u32 2147483648, %v1061_v62 }
 0x15c   :  { %1618 = vrsqrt.f32 %v1073_v63  ;;  %vm1141_vm13 = vcmp.eq.f32.partialorder %v1067_v1, inf  ;;  %vm1143_vm14 = vcmp.eq.f32.partialorder %v1067_v1, 0.0  ;;  %v1144_v8 = vand.u32 2147483648, %v1067_v1 }
 0x15d   :  { %1620 = vrsqrt.f32 %v1067_v1  ;;  %vm1148_vm15 = vcmp.eq.f32.partialorder %v1073_v63, inf  ;;  %v1151_v13 = vand.u32 2147483648, %v1073_v63  ;;  %vm1150_vm0 = vcmp.eq.f32.partialorder %v1073_v63, 0.0 }
 0x15e   :  { %1622 = vrsqrt.f32 %v1079_v2  ;;  %vm1155_vm1 = vcmp.eq.f32.partialorder %v1079_v2, inf  ;;  %v1158_v19 = vand.u32 2147483648, %v1079_v2  ;;  %vm1157_vm2 = vcmp.eq.f32.partialorder %v1079_v2, 0.0 }
 0x165   :  { %v1617_v3 = vpop.eup %1616 }
 0x166   :  { %v1619_v4 = vpop.eup %1618  ;;  %v1133_v5 = vmul.f32 %v1617_v3, %v1061_v62 }
 0x167   :  { %v1621_v7 = vpop.eup %1620  ;;  %v1147_v9 = vmul.f32 %v1619_v4, %v1073_v63 }
 0x168   :  { %v1623_v10 = vpop.eup %1622  ;;  %v1135_v11 = vsel %vm1134_vm11, %v1061_v62, %v1133_v5  ;;  %v1140_v12 = vmul.f32 %v1621_v7, %v1067_v1  ;;  %vm1278_vm11 = vcmp.lt.s32.totalorder %v1207_v60, 512 }
 0x169   :  { %v1138_v14 = vsel %vm1136_vm12, %v1137_v6, %v1135_v11  ;;  %v1149_v15 = vsel %vm1148_vm15, %v1073_v63, %v1147_v9  ;;  %v1154_v16 = vmul.f32 %v1623_v10, %v1079_v2 }
 0x16a   :  { %v1142_v17 = vsel %vm1141_vm13, %v1067_v1, %v1140_v12  ;;  %v1152_v18 = vsel %vm1150_vm0, %v1151_v13, %v1149_v15 }
 0x16b   :  { %v1145_v20 = vsel %vm1143_vm14, %v1144_v8, %v1142_v17  ;;  %v1156_v21 = vsel %vm1155_vm1, %v1079_v2, %v1154_v16 }
 0x16c   :  { %v1159_v25 = vsel %vm1157_vm2, %v1158_v19, %v1156_v21  ;;  %v1202_v26 = vcombine.low %v1138_v14, %v1145_v20 }
 0x16d   :  { %v1203_v27 = vcombine.low %v1152_v18, %v1159_v25 }
 0x16e   :  { %v1224_v28 = vrot.slane %v1202_v26, %v1787_v0 }
 0x16f   :  { %v1231_v42 = vrot.slane %v1203_v27, %v1787_v0 }
 0x171   :  { %v1233_v29 = vcombine.low %v1224_v28, %v1231_v42 }
 0x172   :  { %v972_v30 = vpop.f32.mrb[8].mxu0  ;;  %v1013_v31 = vpop.f32.mrb[8].mxu1 }
 0x173   :  { %v973_v32 = vadd.f32 1e-06, %v972_v30  ;;  %v1014_v34 = vadd.f32 1e-06, %v1013_v31  ;;  %v974_v35 = vpop.f32.mrb[9].mxu0  ;;  %v1015_v36 = vpop.f32.mrb[9].mxu1  ;;  %v1247_v37 = vrot.slane %v1233_v29, %v1787_v0 }
 0x174   :  { %v975_v38 = vadd.f32 1e-06, %v974_v35  ;;  %v1016_v39 = vadd.f32 1e-06, %v1015_v36  ;;  %v976_v40 = vpop.f32.mrb[10].mxu0  ;;  %v1017_v41 = vpop.f32.mrb[10].mxu1 }
 0x175   :  { %v1028_v43 = vmul.f32 %v973_v32, %v973_v32  ;;  %v1030_v44 = vmul.f32 %v1014_v34, %v1014_v34  ;;  %v977_v45 = vpop.f32.mrb[11].mxu0  ;;  %v1018_v46 = vpop.f32.mrb[11].mxu1  ;;  %v1248_v47 = vcombine.low %v1240_v53, %v1247_v37 }
 0x176   :  { %v1029_v48 = vmul.f32 %v975_v38, %v975_v38  ;;  %v1031_v49 = vmul.f32 %v1016_v39, %v1016_v39 }
 0x177   :  { %v1080_v50 = vrot.slane %v1028_v43, 4  ;;  %v1092_v51 = vrot.slane %v1030_v44, 4  ;;  %1275 = vst [vmem:[#allocation7] sm:$0xff] %v1248_v47 }
 0x178   :  { %v1086_v52 = vrot.slane %v1029_v48, 4  ;;  %v1098_v54 = vrot.slane %v1031_v49, 4 }
 0x179   :  { %v1081_v22 = vadd.f32 %v1080_v50, %v1028_v43  ;;  %v1093_v23 = vadd.f32 %v1092_v51, %v1030_v44 }
 0x17a   :  { %v1087_v24 = vadd.f32 %v1086_v52, %v1029_v48  ;;  %v1099_v55 = vadd.f32 %v1098_v54, %v1031_v49 }
 0x17b   :  { %v1082_v33 = vrot.slane %v1081_v22, 2  ;;  %v1094_v56 = vrot.slane %v1093_v23, 2 }
 0x17c   :  { %v1088_v57 = vrot.slane %v1087_v24, 2  ;;  %v1100_v58 = vrot.slane %v1099_v55, 2 }
 0x17d   :  { %v1083_v59 = vadd.f32 %v1082_v33, %v1081_v22  ;;  %v1095_v61 = vadd.f32 %v1094_v56, %v1093_v23 }
 0x17e   :  { %v1089_v62 = vadd.f32 %v1088_v57, %v1087_v24  ;;  %v1101_v63 = vadd.f32 %v1100_v58, %v1099_v55 }
 0x17f   :  { %v1084_v1 = vrot.slane %v1083_v59, 1  ;;  %v1096_v2 = vrot.slane %v1095_v61, 1 }
 0x180   :  { %v1090_v3 = vrot.slane %v1089_v62, 1  ;;  %v1102_v4 = vrot.slane %v1101_v63, 1 }
 0x181   :  { %v1085_v5 = vadd.f32 %v1084_v1, %v1083_v59  ;;  %v1097_v6 = vadd.f32 %v1096_v2, %v1095_v61 }
 0x182   :  { %v1091_v7 = vadd.f32 %v1090_v3, %v1089_v62  ;;  %v1103_v8 = vadd.f32 %v1102_v4, %v1101_v63 }
 0x183   :  { %1624 = vrsqrt.f32 %v1085_v5  ;;  %vm1162_vm3 = vcmp.eq.f32.partialorder %v1085_v5, inf  ;;  %vm1164_vm4 = vcmp.eq.f32.partialorder %v1085_v5, 0.0  ;;  %v1165_v12 = vand.u32 2147483648, %v1085_v5 }
 0x184   :  { %1626 = vrsqrt.f32 %v1097_v6  ;;  %vm1169_vm5 = vcmp.eq.f32.partialorder %v1091_v7, inf  ;;  %vm1171_vm6 = vcmp.eq.f32.partialorder %v1091_v7, 0.0  ;;  %v1172_v14 = vand.u32 2147483648, %v1091_v7 }
 0x185   :  { %1628 = vrsqrt.f32 %v1091_v7  ;;  %vm1176_vm7 = vcmp.eq.f32.partialorder %v1097_v6, inf  ;;  %v1179_v19 = vand.u32 2147483648, %v1097_v6  ;;  %vm1178_vm8 = vcmp.eq.f32.partialorder %v1097_v6, 0.0 }
 0x186   :  { %1630 = vrsqrt.f32 %v1103_v8  ;;  %vm1183_vm9 = vcmp.eq.f32.partialorder %v1103_v8, inf  ;;  %v1186_v28 = vand.u32 2147483648, %v1103_v8  ;;  %vm1185_vm10 = vcmp.eq.f32.partialorder %v1103_v8, 0.0 }
 0x18d   :  { %v1625_v9 = vpop.eup %1624 }
 0x18e   :  { %v1627_v10 = vpop.eup %1626  ;;  %v1161_v11 = vmul.f32 %v1625_v9, %v1085_v5 }
 0x18f   :  { %v1629_v13 = vpop.eup %1628  ;;  %v1175_v15 = vmul.f32 %v1627_v10, %v1097_v6 }
 0x190   :  { %v1631_v16 = vpop.eup %1630  ;;  %v1163_v17 = vsel %vm1162_vm3, %v1085_v5, %v1161_v11  ;;  %v1168_v18 = vmul.f32 %v1629_v13, %v1091_v7 }
 0x191   :  { %v1166_v20 = vsel %vm1164_vm4, %v1165_v12, %v1163_v17  ;;  %v1177_v21 = vsel %vm1176_vm7, %v1097_v6, %v1175_v15  ;;  %v1182_v25 = vmul.f32 %v1631_v16, %v1103_v8 }
 0x192   :  { %v1170_v26 = vsel %vm1169_vm5, %v1091_v7, %v1168_v18  ;;  %v1180_v27 = vsel %vm1178_vm8, %v1179_v19, %v1177_v21 }
 0x193   :  { %v1173_v42 = vsel %vm1171_vm6, %v1172_v14, %v1170_v26  ;;  %v1184_v29 = vsel %vm1183_vm9, %v1103_v8, %v1182_v25 }
 0x194   :  { %v1187_v30 = vsel %vm1185_vm10, %v1186_v28, %v1184_v29  ;;  %v1249_v31 = vcombine.low %v1166_v20, %v1173_v42 }
 0x195   :  { %v1250_v32 = vcombine.low %v1180_v27, %v1187_v30 }
 0x196   :  { %v1257_v34 = vrot.slane %v1249_v31, %v1787_v0 }
 0x197   :  { %v1264_v35 = vrot.slane %v1250_v32, %v1787_v0 }
 0x199   :  { %v1265_v36 = vcombine.low %v1257_v34, %v1264_v35 }
 0x19b   :  { %v1272_v53 = vrot.slane %v1265_v36, %v1787_v0 }
 0x19d   :  { %1280 = vst.msk [vmem:[#allocation7 + $0x8] sm:$0xf] %vm1278_vm11, %v1272_v53 }
 0x19e   :  { %1687 = shalt.err (!%p1684_p6)
}
 0x19f   :  { %s1688_s10 = scalar_lea.hbm %s1825_s2, 192 }
 0x1a0   :  { %p1689_p7 = scmp.ne.s32.totalorder %s1825_s2, %s1688_s10  ;;  %p1692_p8 = scmp.lt.u32.totalorder %s1688_s10, %s1825_s2 }
 0x1a2   :  { %p1694_p9 = pnand %p1692_p8, %p1689_p7 }
 0x1a4   :  { %1697 = shalt.err (!%p1694_p9)
}
 0x1a5   :  { %1290 = dma.vmem_to_hbm [thread:$0]  %s1288_s6, 192, %s1825_s2, [#allocation4]  }
 0x1a6   :  { %1702 = dma.done.wait [#allocation4], 192  }
 0x1a7   :  { %1703 = vsyncadd [#allocation4], 4294967104 }
 0x1a8   :  { %1294 = vsyncpa [#allocation3], 1 }
 0x1a9   :  { %1295 = vsyncpa [#allocation6], 1 }
 0x1aa   :  { %1296 = vsyncpa [#allocation4], 1 }

</bundles_post_ra>
